<compile_context>
chip_gen: v7x
topology: tpu7x:2x2x1
jax: 0.10.0
libtpu: 0.0.40
codegen_flags: <defaults>
</compile_context>

<pallas_src>
import jax
import jax.numpy as jnp
from jax.experimental import pallas as pl
from jax.experimental.pallas import tpu as pltpu


# ----------------------------------------------------------------------------
# Kernels
# ----------------------------------------------------------------------------
def _snn_kernel(a_ref, x_ref, ws_ref, wx_ref, b_ref, o_ref):
    """Monolithic-K variant: out = clip(a@Ws' + x@Wx' + b', 0, 1).

    Ws', Wx', b' already have 1/vth folded in (see prepare_snn_params).
    Activations are cast to the weight (compute) dtype on the VPU so the MXU
    runs bf16-native when compute_dtype=bfloat16.
    """
    cd = ws_ref.dtype
    acc = jnp.dot(a_ref[...].astype(cd), ws_ref[...],
                  preferred_element_type=jnp.float32)
    acc = acc + jnp.dot(x_ref[...].astype(cd), wx_ref[...],
                        preferred_element_type=jnp.float32)
    o_ref[...] = jnp.clip(acc + b_ref[...], 0.0, 1.0).astype(o_ref.dtype)


def _snn_kernel_ktiled(a_ref, x_ref, ws_ref, wx_ref, b_ref, o_ref, acc_ref):
    """K-tiled variant (grid = (j, i, k), k innermost / 'arbitrary')."""
    kk = pl.program_id(2)

    @pl.when(kk == 0)
    def _():
        acc_ref[...] = jnp.zeros_like(acc_ref)

    cd = ws_ref.dtype
    acc_ref[...] += jnp.dot(a_ref[...].astype(cd), ws_ref[...],
                            preferred_element_type=jnp.float32)
    acc_ref[...] += jnp.dot(x_ref[...].astype(cd), wx_ref[...],
                            preferred_element_type=jnp.float32)

    @pl.when(kk == pl.num_programs(2) - 1)
    def _():
        o_ref[...] = jnp.clip(acc_ref[...] + b_ref[...], 0.0, 1.0
                              ).astype(o_ref.dtype)


# ----------------------------------------------------------------------------
# Helpers
# ----------------------------------------------------------------------------
def _round_up(v, m):
    return (v + m - 1) // m * m


def _cdiv(a, b):
    return -(-a // b)


def _vmem_budget_bytes():
    """<= 75% of physical VMEM (generation-aware; never request the whole 64 MiB on v7x)."""
    try:
        cap = int(pltpu.get_tpu_info().vmem_capacity_bytes)
    except Exception:
        cap = 64 * 1024 * 1024  # conservative: v7x per-TC size
    return cap * 3 // 4


def prepare_snn_params(ws, bs, wx, bx, vth, compute_dtype=jnp.bfloat16):
    """One-time (model init) parameter prep, reused across SNN time steps.

    * ws/wx are the PyTorch Linear weights pre-transposed to (d_in, d_out).
    * 1/vth is folded into both weights and the combined bias -> the kernel
      epilogue is add + clip only.
    * d_out is padded to a multiple of 128 so all stores stay lane-dense.
    * Weights are cast to compute_dtype (bf16 by default -> MXU-native).
    """
    d_in, d_out = ws.shape
    inv = 1.0 / float(vth)  # vth is a static scalar in the module
    d_out_p = _round_up(d_out, 128)
    pad = d_out_p - d_out

    ws_p = (ws * inv).astype(compute_dtype)
    wx_p = (wx * inv).astype(compute_dtype)
    b_p = ((jnp.reshape(bs, (1, d_out)) + jnp.reshape(bx, (1, d_out))) * inv
           ).astype(jnp.float32)
    if pad:
        ws_p = jnp.pad(ws_p, ((0, 0), (0, pad)))
        wx_p = jnp.pad(wx_p, ((0, 0), (0, pad)))
        b_p = jnp.pad(b_p, ((0, 0), (0, pad)))
    return ws_p, wx_p, b_p, d_out


def _select_tiles(B_pad, d_in, d_out_p, elem_w, elem_a, budget,
                  tile_m, tile_n, tile_k):
    """Pick (tm, tn, tk) and an estimated VMEM working set (bytes)."""

    def est(tm, tn, tk, nk):
        w = 2 * 2 * tk * tn * elem_w          # ws + wx tiles, double-buffered
        act = 2 * 2 * tm * tk * elem_a        # a + x tiles, double-buffered
        outb = 2 * tm * tn * 4 + 2 * tn * 4   # out tile + bias
        acc = tm * tn * 4 if nk > 1 else 0
        return w + act + outb + acc

    # Batch tile: big enough to fill MXU rows, small enough to keep >= 2 steps.
    if tile_m is not None:
        tm = tile_m
    elif B_pad % 256 == 0 and B_pad >= 512:
        tm = 256
    else:
        tm = min(128, B_pad)

    # Explicit overrides (testing / expert tuning).
    if tile_n is not None or tile_k is not None:
        tn = tile_n if tile_n is not None else d_out_p
        tk = tile_k if tile_k is not None else d_in
        return tm, tn, tk, est(tm, tn, tk, _cdiv(d_in, tk))

    # 1) Full weight residency: single output-column block, W DMA'd once.
    if est(tm, d_out_p, d_in, 1) <= budget:
        return tm, d_out_p, d_in, est(tm, d_out_p, d_in, 1)

    # 2) Tile d_out, keep K monolithic (grid order makes W stream only once).
    for tn in (512, 256, 128):
        if d_out_p % tn == 0 and est(tm, tn, d_in, 1) <= budget:
            return tm, tn, d_in, est(tm, tn, d_in, 1)

    # 3) Very large d_in: add a K reduction axis (needs d_in % 128 == 0).
    if d_in % 128 == 0:
        for tk in (2048, 1024, 512, 256, 128):
            if tk >= d_in or d_in % tk != 0:
                continue
            for tn in (512, 256, 128):
                if d_out_p % tn == 0 and est(tm, tn, tk, d_in // tk) <= budget:
                    return tm, tn, tk, est(tm, tn, tk, d_in // tk)

    # Fallback: smallest legal tiles; caller requests a larger VMEM limit.
    # TODO(synk): shapes with huge, non-128-multiple d_in keep K monolithic.
    tn = 128 if d_out_p % 128 == 0 else d_out_p
    tk = 128 if (d_in % 128 == 0 and d_in > 128) else d_in
    return tm, tn, tk, est(tm, tn, tk, _cdiv(d_in, tk))


# ----------------------------------------------------------------------------
# Forward wrapper (equivalent_func)
# ----------------------------------------------------------------------------
def snn_equivalent_func(a, x, prepped, *, tile_m=None, tile_n=None, tile_k=None):
    """clamp((a @ Ws + bs + x @ Wx + bx) / vth, 0, 1), prepped = prepare_snn_params(...)."""
    ws, wx, b, d_out = prepped
    B, d_in = a.shape
    assert x.shape == (B, d_in), "a and x must share (batch, d_in)"
    assert ws.shape[0] == d_in and wx.shape[0] == d_in
    d_out_p = ws.shape[1]

    # Pad batch to a multiple of 128 (lane/sublane-friendly, full MXU rows).
    B_pad = _round_up(max(B, 1), 128)
    if B_pad != B:
        a = jnp.pad(a, ((0, B_pad - B), (0, 0)))
        x = jnp.pad(x, ((0, B_pad - B), (0, 0)))

    elem_w = jnp.dtype(ws.dtype).itemsize
    elem_a = jnp.dtype(a.dtype).itemsize
    budget = _vmem_budget_bytes()

    tm, tn, tk, working_set = _select_tiles(
        B_pad, d_in, d_out_p, elem_w, elem_a, budget, tile_m, tile_n, tile_k)

    num_i = B_pad // tm
    num_j = d_out_p // tn
    num_k = _cdiv(d_in, tk)

    # Keep >= 2 grid steps so both v7x TensorCores get work.
    if tile_m is None and num_i * num_j == 1 and tm > 8 and tm % 16 == 0:
        tm //= 2
        num_i = B_pad // tm

    vmem_limit = None
    if working_set > 16 * 1024 * 1024:
        vmem_limit = min(budget, working_set * 5 // 4 + (1 << 20))

    out_shape = jax.ShapeDtypeStruct((B_pad, d_out_p), jnp.float32)

    if num_k == 1:
        out = pl.pallas_call(
            _snn_kernel,
            out_shape=out_shape,
            grid_spec=pltpu.PrefetchScalarGridSpec(
                num_scalar_prefetch=0,
                # j (output columns) slow, i (batch) fast: each weight column
                # block is DMA'd once; with num_j == 1, W is resident.
                grid=(num_j, num_i),
                in_specs=[
                    pl.BlockSpec((tm, d_in), lambda j, i: (i, 0)),   # a
                    pl.BlockSpec((tm, d_in), lambda j, i: (i, 0)),   # x
                    pl.BlockSpec((d_in, tn), lambda j, i: (0, j)),   # Ws/vth
                    pl.BlockSpec((d_in, tn), lambda j, i: (0, j)),   # Wx/vth
                    pl.BlockSpec((1, tn), lambda j, i: (0, j)),      # (bs+bx)/vth
                ],
                out_specs=pl.BlockSpec((tm, tn), lambda j, i: (i, j)),
            ),
            compiler_params=pltpu.CompilerParams(
                dimension_semantics=("parallel", "parallel"),
                vmem_limit_bytes=vmem_limit,
            ),
        )(a, x, ws, wx, b)
    else:
        out = pl.pallas_call(
            _snn_kernel_ktiled,
            out_shape=out_shape,
            grid_spec=pltpu.PrefetchScalarGridSpec(
                num_scalar_prefetch=0,
                grid=(num_j, num_i, num_k),  # K last (reduction)
                in_specs=[
                    pl.BlockSpec((tm, tk), lambda j, i, k: (i, k)),   # a
                    pl.BlockSpec((tm, tk), lambda j, i, k: (i, k)),   # x
                    pl.BlockSpec((tk, tn), lambda j, i, k: (k, j)),   # Ws/vth
                    pl.BlockSpec((tk, tn), lambda j, i, k: (k, j)),   # Wx/vth
                    pl.BlockSpec((1, tn), lambda j, i, k: (0, j)),    # bias
                ],
                out_specs=pl.BlockSpec((tm, tn), lambda j, i, k: (i, j)),
                scratch_shapes=[pltpu.VMEM((tm, tn), jnp.float32)],
            ),
            compiler_params=pltpu.CompilerParams(
                dimension_semantics=("parallel", "parallel", "arbitrary"),
                vmem_limit_bytes=vmem_limit,
            ),
        )(a, x, ws, wx, b)

    if B_pad != B or d_out_p != d_out:
        out = out[:B, :d_out]
    return out


# ----------------------------------------------------------------------------
# Self-test
# ----------------------------------------------------------------------------
if __name__ == "__main__":
    key = jax.random.PRNGKey(0)
    k0, k1, k2, k3, k4, k5, k6 = jax.random.split(key, 7)

    B, D_IN, D_OUT = 256, 256, 128
    VTH = 2.0

    # PyTorch Linear default init: U(-1/sqrt(fan_in), +1/sqrt(fan_in)).
    bound = 1.0 / (D_IN ** 0.5)
    ws = jax.random.uniform(k0, (D_IN, D_OUT), jnp.float32, -bound, bound)  # network_s W^T
    bs = jax.random.uniform(k1, (1, D_OUT), jnp.float32, -bound, bound)     # network_s bias
    wx = jax.random.uniform(k2, (D_IN, D_OUT), jnp.float32, -bound, bound)  # network_x W^T
    bx = jax.random.uniform(k3, (1, D_OUT), jnp.float32, -bound, bound)     # network_x bias

    a = jax.random.uniform(k4, (B, D_IN), jnp.float32)   # SNN rate state in [0, 1]
    x = jax.random.normal(k5, (B, D_IN), jnp.float32)    # external input

    ref = jnp.clip((a @ ws + bs + x @ wx + bx) / VTH, 0.0, 1.0)

    # Case 1: bf16 MXU path (default), resident weights, grid (1, 2).
    prepped_bf16 = prepare_snn_params(ws, bs, wx, bx, VTH,
                                      compute_dtype=jnp.bfloat16)
    out = jax.block_until_ready(snn_equivalent_func(a, x, prepped_bf16))
    assert out.shape == (B, D_OUT) and out.dtype == jnp.float32
    assert jnp.allclose(out, ref, atol=5e-2), "bf16 path mismatch vs reference"

    # Case 2: f32 compute path (bit-accurate check of the kernel structure).
    prepped_f32 = prepare_snn_params(ws, bs, wx, bx, VTH,
                                     compute_dtype=jnp.float32)
    out32 = jax.block_until_ready(snn_equivalent_func(a, x, prepped_f32))
    assert jnp.allclose(out32, ref, atol=1e-5), "f32 path mismatch vs reference"

    # Case 3: force the K-tiled accumulator path (exercised for large d_in).
    out_kt = jax.block_until_ready(
        snn_equivalent_func(a, x, prepped_f32, tile_k=128))
    assert jnp.allclose(out_kt, ref, atol=1e-5), "K-tiled path mismatch"

    # Case 4: tiny ragged shapes -> batch / d_out padding + grid-split path.
    Br, DIr, DOr = 6, 40, 24
    bnd = 1.0 / (DIr ** 0.5)
    kk = jax.random.split(k6, 6)
    ws_r = jax.random.uniform(kk[0], (DIr, DOr), jnp.float32, -bnd, bnd)
    bs_r = jax.random.uniform(kk[1], (1, DOr), jnp.float32, -bnd, bnd)
    wx_r = jax.random.uniform(kk[2], (DIr, DOr), jnp.float32, -bnd, bnd)
    bx_r = jax.random.uniform(kk[3], (1, DOr), jnp.float32, -bnd, bnd)
    a_r = jax.random.uniform(kk[4], (Br, DIr), jnp.float32)
    x_r = jax.random.normal(kk[5], (Br, DIr), jnp.float32)
    ref_r = jnp.clip((a_r @ ws_r + bs_r + x_r @ wx_r + bx_r) / VTH, 0.0, 1.0)
    prepped_r = prepare_snn_params(ws_r, bs_r, wx_r, bx_r, VTH,
                                   compute_dtype=jnp.float32)
    out_r = jax.block_until_ready(snn_equivalent_func(a_r, x_r, prepped_r))
    assert out_r.shape == (Br, DOr)
    assert jnp.allclose(out_r, ref_r, atol=1e-5), "ragged-shape path mismatch"

    print("KERNEL_OK")
</pallas_src>

<mosaic_0001>
module attributes {stable_mosaic.version = 11 : i64} {
  func.func @_snn_kernel(%arg0: i32, %arg1: i32, %arg2: memref<128x256xf32, #tpu.memory_space<vmem>>, %arg3: memref<128x256xf32, #tpu.memory_space<vmem>>, %arg4: memref<256x128xbf16, #tpu.memory_space<vmem>>, %arg5: memref<256x128xbf16, #tpu.memory_space<vmem>>, %arg6: memref<1x128xf32, #tpu.memory_space<vmem>>, %arg7: memref<128x128xf32, #tpu.memory_space<vmem>>) attributes {dimension_semantics = [#tpu.dimension_semantics<parallel>, #tpu.dimension_semantics<parallel>], iteration_bounds = array<i64: 1, 2>, scalar_prefetch = 0 : i64, scratch_operands = 0 : i64, tpu.core_type = #tpu.core_type<tc>, window_params = [{transform_indices = @transform_0, window_bounds = array<i64: 128, 256>}, {transform_indices = @transform_1, window_bounds = array<i64: 128, 256>}, {transform_indices = @transform_2, window_bounds = array<i64: 256, 128>}, {transform_indices = @transform_3, window_bounds = array<i64: 256, 128>}, {transform_indices = @transform_4, window_bounds = array<i64: 1, 128>}, {transform_indices = @transform_5, window_bounds = array<i64: 128, 128>}]} {
    %c0 = arith.constant 0 : index
    %c0_0 = arith.constant 0 : index
    %0 = vector.load %arg2[%c0, %c0_0] : memref<128x256xf32, #tpu.memory_space<vmem>>, vector<128x256xf32>
    %1 = arith.truncf %0 : vector<128x256xf32> to vector<128x256xbf16>
    %c0_1 = arith.constant 0 : index
    %c0_2 = arith.constant 0 : index
    %2 = vector.load %arg4[%c0_1, %c0_2] : memref<256x128xbf16, #tpu.memory_space<vmem>>, vector<256x128xbf16>
    %cst = arith.constant dense<0.000000e+00> : vector<128x128xf32>
    %3 = tpu.matmul %1, %2, %cst {dimension_numbers = #tpu.dot_dimension_numbers<[1], [0], [0], [1], [0, 0, 1, 1], [], []>} : vector<128x256xbf16>, vector<256x128xbf16>, vector<128x128xf32> -> vector<128x128xf32>
    %c0_3 = arith.constant 0 : index
    %c0_4 = arith.constant 0 : index
    %4 = vector.load %arg3[%c0_3, %c0_4] : memref<128x256xf32, #tpu.memory_space<vmem>>, vector<128x256xf32>
    %5 = arith.truncf %4 : vector<128x256xf32> to vector<128x256xbf16>
    %c0_5 = arith.constant 0 : index
    %c0_6 = arith.constant 0 : index
    %6 = vector.load %arg5[%c0_5, %c0_6] : memref<256x128xbf16, #tpu.memory_space<vmem>>, vector<256x128xbf16>
    %cst_7 = arith.constant dense<0.000000e+00> : vector<128x128xf32>
    %7 = tpu.matmul %5, %6, %cst_7 {dimension_numbers = #tpu.dot_dimension_numbers<[1], [0], [0], [1], [0, 0, 1, 1], [], []>} : vector<128x256xbf16>, vector<256x128xbf16>, vector<128x128xf32> -> vector<128x128xf32>
    %8 = arith.addf %3, %7 : vector<128x128xf32>
    %c0_8 = arith.constant 0 : index
    %c0_9 = arith.constant 0 : index
    %9 = vector.load %arg6[%c0_8, %c0_9] : memref<1x128xf32, #tpu.memory_space<vmem>>, vector<1x128xf32>
    %10 = vector.broadcast %9 : vector<1x128xf32> to vector<128x128xf32>
    %11 = arith.addf %8, %10 : vector<128x128xf32>
    %cst_10 = arith.constant 0.000000e+00 : f32
    %cst_11 = arith.constant 1.000000e+00 : f32
    %12 = vector.broadcast %cst_10 : f32 to vector<128x128xf32>
    %13 = arith.maximumf %12, %11 : vector<128x128xf32>
    %14 = vector.broadcast %cst_11 : f32 to vector<128x128xf32>
    %15 = arith.minimumf %14, %13 : vector<128x128xf32>
    %c0_12 = arith.constant 0 : index
    %c0_13 = arith.constant 0 : index
    %16 = vector.load %arg7[%c0_12, %c0_13] : memref<128x128xf32, #tpu.memory_space<vmem>>, vector<128x128xf32>
    tpu.vector_store %arg7[%c0_12, %c0_13], %15 {strides = array<i32>} : memref<128x128xf32, #tpu.memory_space<vmem>>, vector<128x128xf32>,
    return
  }
  func.func @transform_0(%arg0: i32, %arg1: i32) -> (i32, i32) {
    %c0_i32 = arith.constant 0 : i32
    %c0_i32_0 = arith.constant 0 : i32
    return %arg1, %c0_i32 : i32, i32
  }
  func.func @transform_1(%arg0: i32, %arg1: i32) -> (i32, i32) {
    %c0_i32 = arith.constant 0 : i32
    %c0_i32_0 = arith.constant 0 : i32
    return %arg1, %c0_i32 : i32, i32
  }
  func.func @transform_2(%arg0: i32, %arg1: i32) -> (i32, i32) {
    %c0_i32 = arith.constant 0 : i32
    %c0_i32_0 = arith.constant 0 : i32
    return %c0_i32, %arg0 : i32, i32
  }
  func.func @transform_3(%arg0: i32, %arg1: i32) -> (i32, i32) {
    %c0_i32 = arith.constant 0 : i32
    %c0_i32_0 = arith.constant 0 : i32
    return %c0_i32, %arg0 : i32, i32
  }
  func.func @transform_4(%arg0: i32, %arg1: i32) -> (i32, i32) {
    %c0_i32 = arith.constant 0 : i32
    %c0_i32_0 = arith.constant 0 : i32
    return %c0_i32, %arg0 : i32, i32
  }
  func.func @transform_5(%arg0: i32, %arg1: i32) -> (i32, i32) {
    %c0_i32 = arith.constant 0 : i32
    return %arg1, %arg0 : i32, i32
  }
}

</mosaic_0001>

<bundles_post_ra>
// kernel: tpu_custom_call.1
= control target key start
LH: loop header
LB: loop body
LE: loop exit
PB: predicated region body
PF: predicated region fallthrough
CT: control target
= control target key end

     0   :  { %s2121_s0 = inlined_call_operand.hbm [shape: f32[256,256], index: 0, kind: input, shape index: {}]   ;;  %s2122_s1 = inlined_call_operand.hbm [shape: f32[256,256], index: 1, kind: input, shape index: {}]   ;;  %s2123_s2 = inlined_call_operand.hbm [shape: bf16[256,128], index: 2, kind: input, shape index: {}]   ;;  %s2124_s3 = inlined_call_operand.hbm [shape: bf16[256,128], index: 3, kind: input, shape index: {}]   ;;  %s2125_s4 = inlined_call_operand.vmem [shape: f32[1,128], index: 4, kind: input, shape index: {}]   ;;  %s2126_s5 = inlined_call_operand.hbm [shape: f32[256,128], index: 5, kind: output, shape index: {}]  }
   0x1   :  { %2132 = sst [smem:[#allocation17_spill]] %s2121_s0 }
   0x2   :  { %2133 = sst [smem:[#allocation18_spill]] %s2123_s2 }
   0x3   :  { %2134 = sst [smem:[#allocation19_spill]] %s2124_s3 }
   0x4   :  { %10 = vsyncpa [#allocation3], 0 }
   0x5   :  { %12 = vsyncpa [#allocation3 + $0x1], 0 }
   0x6   :  { %13 = vsyncpa [#allocation6], 0 }
   0x7   :  { %15 = vsyncpa [#allocation6 + $0x1], 0 }
   0x8   :  { %16 = vsyncpa [#allocation9], 0 }
   0x9   :  { %17 = vsyncpa [#allocation4], 0 }
   0xa   :  { %19 = vsyncpa [#allocation4 + $0x1], 0  ;;  %s1704_s18 = smov 0   ;;  %s1706_s19 = smov 0  }
   0xb   :  { %s1708_s20 = smov 0   ;;  %s1710_s21 = smov 0  }
   0xc   :  { %s1712_s22 = smov 0   ;;  %s1714_s23 = smov 0  }
   0xd LB: > { %s1735_s24 = sadd.s32 4294967295, %s1661_s23   ;;  %s1134_s25 = sadd.s32 4294967294, %s1661_s23   ;;  %s1661_s23 = sphi %s1714_s23, %s25_s23   ;;  %s1657_s22 = sphi %s1712_s22, %s2160_s22   ;;  %s1653_s21 = sphi %s1710_s21, %s2159_s21   ;;  %s1649_s20 = sphi %s1708_s20, %s2158_s20   ;;  %s1645_s19 = sphi %s1706_s19, %s2157_s19   ;;  %s1641_s18 = sphi %s1704_s18, %s2156_s18  }
   0xe   : > { %p57_p0 = scmp.ne.s32.totalorder %s1645_s19, %s1641_s18  ;;  %p2127_p1 = scmp.eq.s32.totalorder %s1735_s24, 0 }
   0xf   : > { %p193_p3 = scmp.eq.s32.totalorder %s1134_s25, 1  ;;  %p1135_p5 = scmp.ge.s32.totalorder %s1661_s23, 1 }
  0x10   : > { %p1744_p4 = por %p2127_p1, %p57_p0  ;;  %p200_p7 = scmp.lt.s32.totalorder %s1661_s23, 3 }
  0x11   : > { %p1749_p6 = por %p193_p3, %p57_p0  ;;  %s1663_s29 = smov [#allocation7]  }
  0x12   : > { %s2135_s26 = scalar_select %p1744_p4, 1, 0 }
  0x13   : > { %s2136_s27 = scalar_select %p1749_p6, 1, 0 }
  0x14   : > { %p1754_p8 = pnand %p1135_p5, %p200_p7  ;;  %s214_s30 = sshll.u32 %s1663_s29, 4  ;;  %s1758_s30 = int_to_ptr.vmem [resolvable:$true] %s214_s30 }
  0x15   : > { %s1664_s7 = smov [#allocation8]   ;;  %s2139_s2 = sld [smem:[#allocation18_spill]] }
  0x16   : > { %p1339_p9 = pneg %p1754_p8  ;;  %s229_s8 = sshll.u32 %s1664_s7, 4  ;;  %s1769_s8 = int_to_ptr.vmem [resolvable:$true] %s229_s8 }
  0x18   : > { %p1765_p11 = pnand %p1339_p9, %p2127_p1 }
  0x1a   : > { %p1453_p13 = pneg %p1765_p11 }
  0x1b   : > { %s1451_s11 = scalar_lea.hbm %s2139_s2, 2048 }
  0x1c   : > { %p1452_p12 = scmp.ne.s32.totalorder %s2139_s2, %s1451_s11  ;;  %p1458_p5 = scmp.lt.u32.totalorder %s1451_s11, %s2139_s2 }
  0x1e   : > { %p1454_p0 = pnand %p1453_p13, %p1452_p12 }
  0x20   : > { %p1455_p3 = pneg %p1454_p0 }
  0x22   : > { %p1460_p7 = pnand %p1458_p5, %p1455_p3 }
  0x24   : > { %1463 = shalt.err (!%p1460_p7)
}
  0x25   : > { %s1464_s16 = scalar_lea.vmem %s1758_s30, 2048  ;;  %p1472_p2 = scmp.lt.s32.totalorder %s1758_s30, %s1758_s30 }
  0x26   : > { %p1465_p9 = scmp.ne.s32.totalorder %s1758_s30, %s1464_s16  ;;  %p1473_p12 = scmp.lt.s32.totalorder %s1464_s16, %s1464_s16 }
  0x28   : > { %p1467_p10 = pnand %p1465_p9, %p1453_p13  ;;  %p1474_p0 = por %p1473_p12, %p1472_p2 }
  0x2a   : > { %p1468_p1 = pneg %p1467_p10 }
  0x2c   : > { %p1475_p6 = pnand %p1474_p0, %p1468_p1 }
  0x2e   : > { %1478 = shalt.err (!%p1475_p6)
}
  0x2f   : > { %s1665_s17 = smov 64   ;;  %s1666_s25 = smov 4  }
  0x30   : > { %1342 = dma.hbm_to_vmem [thread:$0]  (!%p1765_p11), %s2139_s2, 2048, %s1758_s30, [#allocation6], %s1665_s17, %s1665_s17, %s1666_s25  }
  0x31   : > { %s2140_s3 = sld [smem:[#allocation19_spill]] }
  0x37   : > { %s1479_s11 = scalar_lea.hbm %s2140_s3, 2048 }
  0x38   : > { %p1480_p2 = scmp.ne.s32.totalorder %s2140_s3, %s1479_s11  ;;  %p1486_p10 = scmp.lt.u32.totalorder %s1479_s11, %s2140_s3 }
  0x3a   : > { %p1482_p1 = pnand %p1480_p2, %p1453_p13 }
  0x3c   : > { %p1483_p6 = pneg %p1482_p1 }
  0x3e   : > { %p1488_p3 = pnand %p1486_p10, %p1483_p6 }
  0x40   : > { %1491 = shalt.err (!%p1488_p3)
}
  0x41   : > { %s1492_s30 = scalar_lea.vmem %s1769_s8, 2048  ;;  %p1500_p12 = scmp.lt.s32.totalorder %s1769_s8, %s1769_s8 }
  0x42   : > { %p1493_p5 = scmp.ne.s32.totalorder %s1769_s8, %s1492_s30  ;;  %p1501_p0 = scmp.lt.s32.totalorder %s1492_s30, %s1492_s30 }
  0x44   : > { %p1495_p7 = pnand %p1493_p5, %p1453_p13  ;;  %p1502_p2 = por %p1501_p0, %p1500_p12 }
  0x46   : > { %p1496_p9 = pneg %p1495_p7 }
  0x48   : > { %p1503_p1 = pnand %p1502_p2, %p1496_p9 }
  0x4a   : > { %1506 = shalt.err (!%p1503_p1)
}
  0x4b   : > { %1345 = dma.hbm_to_vmem [thread:$0]  (!%p1765_p11), %s2140_s3, 2048, %s1769_s8, [#allocation9], %s1665_s17, %s1665_s17, %s1666_s25  }
  0x4c   : > { %s34_s7 = sadd.s32 1, %s1657_s22  ;;  %s44_s9 = sadd.s32 1, %s1649_s20 }
  0x4d   : > { %p35_p13 = scmp.ge.s32.totalorder %s34_s7, 2  ;;  %p51_p6 = scmp.ne.s32.totalorder %s1649_s20, %s1645_s19 }
  0x4e   : > { %p52_p10 = scmp.eq.s32.totalorder %s1661_s23, 0  ;;  %p1359_p3 = scmp.lt.s32.totalorder %s1661_s23, 2 }
  0x4f   : > { %s2162_s7 = smov (%p35_p13, %s34_s7), 0  ;;  %p2142_p7 = scmp.eq.s32.totalorder %s1735_s24, 1 }
  0x50   : > { %2141 = sst [smem:[#allocation16_spill]] %s2162_s7  ;;  %p53_p5 = por %p52_p10, %p51_p6 }
  0x51   : > { %p1833_p9 = por %p2142_p7, %p51_p6  ;;  %s41_s10 = ssub.s32 %s1657_s22, %s2162_s7 }
  0x52   : > { %s249_s11 = sand.u32 1, %s1649_s20   ;;  %p42_p11 = scmp.eq.s32.totalorder %s41_s10, 0 }
  0x53   : > { %s2143_s6 = scalar_select %p1833_p9, 1, 0 }
  0x54   : > { %s1840_s8 = sshll.u32 %s249_s11, 8  ;;  %s2128_s17 = sshll.u32 %s1657_s22, 12 }
  0x55   : > { %s1844_s25 = scalar_select %p42_p11, %s1649_s20, %s44_s9  }
  0x56   : > { %s2144_s0 = sld [smem:[#allocation17_spill]]  ;;  %s253_s15 = scalar_lea.vmem [#allocation2], %s1840_s8 }
  0x57   : > { %s261_s30 = sshll.u32 %s253_s15, 4  ;;  %p1856_p12 = pnand %p1359_p3, %p53_p5  ;;  %s1860_s30 = int_to_ptr.vmem [resolvable:$true] %s261_s30 }
  0x58   : > { %s1862_s29 = scalar_lea.sflag [#allocation3], %s249_s11 }
  0x59   : > { %p1509_p2 = pneg %p1856_p12 }
  0x5c   : > { %s1851_s14 = scalar_lea.hbm %s2144_s0, %s2128_s17  ;;  %s1512_s13 = scalar_lea.hbm %s2144_s0, 8192 }
  0x5d   : > { %s1507_s9 = scalar_lea.hbm %s1851_s14, 4096  ;;  %p1513_p6 = scmp.lt.u32.totalorder %s1851_s14, %s2144_s0 }
  0x5e   : > { %p1508_p0 = scmp.ne.s32.totalorder %s1851_s14, %s1507_s9  ;;  %p1514_p10 = scmp.lt.u32.totalorder %s1512_s13, %s1507_s9 }
  0x5f   : > { %p1516_p5 = scmp.lt.u32.totalorder %s1507_s9, %s1851_s14 }
  0x60   : > { %p1510_p1 = pnand %p1509_p2, %p1508_p0  ;;  %p1515_p3 = por %p1514_p10, %p1513_p6 }
  0x62   : > { %p1511_p13 = pneg %p1510_p1  ;;  %p1517_p7 = por %p1516_p5, %p1515_p3 }
  0x64   : > { %p1518_p11 = pnand %p1517_p7, %p1511_p13 }
  0x66   : > { %1521 = shalt.err (!%p1518_p11)
}
  0x67   : > { %s1522_s11 = scalar_lea.vmem %s1860_s30, 4096  ;;  %s1667_s10 = smov [#allocation2]  }
  0x68   : > { %p1523_p0 = scmp.ne.s32.totalorder %s1860_s30, %s1522_s11  ;;  %s1527_s12 = sshll.u32 %s1667_s10, 4  ;;  %s1528_s12 = int_to_ptr.vmem [resolvable:$false] %s1527_s12 }
  0x69   : > { %s1529_s17 = scalar_lea.vmem %s1528_s12, 8192  ;;  %p1530_p4 = scmp.lt.s32.totalorder %s1860_s30, %s1528_s12 }
  0x6a   : > { %p1525_p1 = pnand %p1523_p0, %p1509_p2  ;;  %p1531_p6 = scmp.lt.s32.totalorder %s1529_s17, %s1522_s11 }
  0x6c   : > { %p1526_p9 = pneg %p1525_p1  ;;  %p1532_p10 = por %p1531_p6, %p1530_p4 }
  0x6e   : > { %p1533_p3 = pnand %p1532_p10, %p1526_p9 }
  0x70   : > { %1536 = shalt.err (!%p1533_p3)
}
  0x71   : > { %s1668_s9 = smov 256   ;;  %s1669_s13 = smov 16  }
  0x72   : > { %1349 = dma.hbm_to_vmem [thread:$0]  (!%p1856_p12), %s1851_s14, 4096, %s1860_s30, %s1862_s29, %s1668_s9, %s1668_s9, %s1669_s13  }
  0x73   : > { %s2146_s15 = sshll.u32 %s1657_s22, 12  ;;  %s275_s17 = scalar_lea.vmem [#allocation5], %s1840_s8 }
  0x74   : > { %s1898_s12 = scalar_lea.hbm %s2122_s1, %s2146_s15  ;;  %s283_s0 = sshll.u32 %s275_s17, 4  ;;  %s1902_s0 = int_to_ptr.vmem [resolvable:$true] %s283_s0 }
  0x75   : > { %s271_s2 = sand.u32 1, %s1661_s23   ;;  %s1537_s7 = scalar_lea.hbm %s1898_s12, 4096 }
  0x76   : > { %s1904_s3 = scalar_lea.sflag [#allocation6], %s271_s2  ;;  %p1538_p4 = scmp.ne.s32.totalorder %s1898_s12, %s1537_s7 }
  0x77   : > { %s1542_s29 = scalar_lea.hbm %s2122_s1, 8192  ;;  %p1543_p5 = scmp.lt.u32.totalorder %s1898_s12, %s2122_s1 }
  0x78   : > { %p1540_p9 = pnand %p1538_p4, %p1509_p2  ;;  %p1544_p7 = scmp.lt.u32.totalorder %s1542_s29, %s1537_s7 }
  0x79   : > { %p1546_p0 = scmp.lt.u32.totalorder %s1537_s7, %s1898_s12 }
  0x7a   : > { %p1541_p13 = pneg %p1540_p9  ;;  %p1545_p11 = por %p1544_p7, %p1543_p5 }
  0x7c   : > { %p1547_p1 = por %p1546_p0, %p1545_p11 }
  0x7e   : > { %p1548_p6 = pnand %p1547_p1, %p1541_p13 }
  0x80   : > { %1551 = shalt.err (!%p1548_p6)
}
  0x81   : > { %s1552_s2 = scalar_lea.vmem %s1902_s0, 4096  ;;  %s1670_s8 = smov [#allocation5]  }
  0x82   : > { %p1553_p10 = scmp.ne.s32.totalorder %s1902_s0, %s1552_s2  ;;  %s1557_s10 = sshll.u32 %s1670_s8, 4  ;;  %s1558_s10 = int_to_ptr.vmem [resolvable:$false] %s1557_s10 }
  0x83   : > { %s1559_s17 = scalar_lea.vmem %s1558_s10, 8192  ;;  %p1560_p9 = scmp.lt.s32.totalorder %s1902_s0, %s1558_s10 }
  0x84   : > { %p1555_p3 = pnand %p1553_p10, %p1509_p2  ;;  %p1561_p5 = scmp.lt.s32.totalorder %s1559_s17, %s1552_s2 }
  0x86   : > { %p1556_p4 = pneg %p1555_p3  ;;  %p1562_p7 = por %p1561_p5, %p1560_p9 }
  0x88   : > { %p1563_p11 = pnand %p1562_p7, %p1556_p4 }
  0x8a   : > { %1566 = shalt.err (!%p1563_p11)
}
  0x8b   : > { %1352 = dma.hbm_to_vmem [thread:$0]  (!%p1856_p12), %s1898_s12, 4096, %s1902_s0, %s1904_s3, %s1668_s9, %s1668_s9, %s1669_s13  }
  0x8c   : > { %295 = sbr.rel (%p1754_p8) target bundleno = 488 (0x1e8), region = 40  ;;  %s1936_s7 = sand.u32 (!%p1754_p8), 1, %s1645_s19  }
  0x8d   : > { %s1149_s14 = sshll.u32 (!%p1754_p8), %s1936_s7, 8  ;;  %s298_s30 = scalar_lea.sflag (!%p1754_p8), [#allocation3], %s1936_s7 }
  0x8e   : > { %s1940_s29 = scalar_lea.vmem (!%p1754_p8), [#allocation2], %s1149_s14  ;;  %p2147_p2 = scmp.ne.s32.totalorder (!%p1754_p8), %s2135_s26, 0 }
  0x93   : > { %1620 = dma.done.wait (%p2147_p2), %s298_s30, 4096  }
  0x94   : > { %1622 = vsyncadd (%p2147_p2), %s298_s30, 4294963200  ;;  %s306_s0 = sand.u32 1, %s1735_s24   ;;  %s1947_s28 = scalar_lea.vmem [#allocation5], %s1149_s14 }
  0x95   : > { %s307_s3 = scalar_lea.sflag [#allocation6], %s306_s0 }
  0x96   : > { %1624 = dma.done.wait (%p2147_p2), %s307_s3, 4096  }
  0x97   : > { %1626 = vsyncadd (%p2147_p2), %s307_s3, 4294963200  ;;  %p2148_p8 = scmp.eq.s32.totalorder %s1735_s24, 0 }
  0x99   : > { %1628 = dma.done.wait (%p2148_p8), [#allocation6], 2048   ;;  %p2149_p12 = pmov %p2148_p8 }
  0x9a   : > { %p2150_p13 = pmov %p2148_p8 }
  0x9b   : > { %1630 = vsyncadd (%p2149_p12), [#allocation6], 4294965248 }
  0x9c   : > { %1632 = dma.done.wait (%p2150_p13), [#allocation9], 2048   ;;  %p2151_p0 = pmov %p2148_p8 }
  0x9d   : > { %v1419_v0 = vld [vmem:[#allocation8 + $0x40] sm:$0xff]   ;;  %v1423_v4 = vld [vmem:[#allocation8 + $0x48] sm:$0xff]   ;;  %v1427_v8 = vld [vmem:[#allocation8 + $0x50] sm:$0xff]   ;;  %s1153_s16 = sshll.u32 %s1936_s7, 7  ;;  %s1196_s13 = sshll.u32 %s1653_s21, 11 }
  0x9e   : > { %1634 = vsyncadd (%p2151_p0), [#allocation9], 4294965248  ;;  %v1420_v1 = vld [vmem:[#allocation7 + $0x40] sm:$0xff]   ;;  %1197 = vmatprep.subr.bf16.mxu0 %v1419_v0  ;;  %v1424_v5 = vld [vmem:[#allocation7 + $0x48] sm:$0xff]   ;;  %s2033_s9 = scalar_lea.vmem [#allocation10], %s1153_s16  ;;  %s2068_s2 = scalar_lea.hbm %s2126_s5, %s1196_s13 }
  0x9f   : > { %v1421_v2 = vld [vmem:[#allocation8] sm:$0xff]   ;;  %1261 = vmatprep.subr.bf16.mxu1 %v1420_v1  ;;  %v1425_v6 = vld [vmem:[#allocation8 + $0x8] sm:$0xff]   ;;  %v1428_v9 = vld [vmem:[#allocation7 + $0x50] sm:$0xff]   ;;  %s992_s12 = sshll.u32 %s2033_s9, 4  ;;  %s978_s8 = scalar_lea.sflag [#allocation4], %s1936_s7  ;;  %s2070_s12 = int_to_ptr.vmem [resolvable:$true] %s992_s12 }
  0xa0   : > { %v1422_v3 = vld [vmem:[#allocation7] sm:$0xff]   ;;  %1198 = vmatpush3.bf16.msra.mxu0 %v1421_v2  ;;  %v1426_v7 = vld [vmem:[#allocation7 + $0x8] sm:$0xff]   ;;  %v1429_v10 = vld [vmem:[#allocation8 + $0x10] sm:$0xff]   ;;  %s1567_s10 = scalar_lea.vmem %s2070_s12, 2048  ;;  %p2152_p6 = scmp.ne.s32.totalorder %s2143_s6, 0 }
  0xa1   : > { %1262 = vmatpush3.bf16.msra.mxu1 %v1422_v3  ;;  %1199 = vmatprep.subr.bf16.mxu0 %v1423_v4  ;;  %v1430_v11 = vld [vmem:[#allocation7 + $0x10] sm:$0xff]   ;;  %v1431_v12 = vld [vmem:[#allocation8 + $0x58] sm:$0xff]   ;;  %v1435_v16 = vld [vmem:[#allocation8 + $0x60] sm:$0xff]   ;;  %p1568_p1 = scmp.ne.s32.totalorder %s2070_s12, %s1567_s10  ;;  %s1671_s21 = smov [#allocation10]  }
  0xa2   : > { %1263 = vmatprep.subr.bf16.mxu1 %v1424_v5  ;;  %v1432_v13 = vld [vmem:[#allocation7 + $0x58] sm:$0xff]   ;;  %v1436_v17 = vld [vmem:[#allocation7 + $0x60] sm:$0xff]   ;;  %v1439_v20 = vld [vmem:[#allocation8 + $0x68] sm:$0xff]   ;;  %s1571_s17 = sshll.u32 %s1671_s21, 4  ;;  %s1572_s17 = int_to_ptr.vmem [resolvable:$false] %s1571_s17 }
  0xa3   : > { %v1433_v14 = vld [vmem:[#allocation8 + $0x18] sm:$0xff]   ;;  %v1437_v18 = vld [vmem:[#allocation8 + $0x20] sm:$0xff]   ;;  %v1440_v21 = vld [vmem:[#allocation7 + $0x68] sm:$0xff]   ;;  %p1569_p10 = pnand %p1568_p1, %p2152_p6  ;;  %s1573_s14 = scalar_lea.vmem %s1572_s17, 4096 }
  0xa4   : > { %1200 = vmatpush3.bf16.msra.mxu0 %v1425_v6  ;;  %v1434_v15 = vld [vmem:[#allocation7 + $0x18] sm:$0xff]   ;;  %v1438_v19 = vld [vmem:[#allocation7 + $0x20] sm:$0xff]   ;;  %v1441_v22 = vld [vmem:[#allocation8 + $0x28] sm:$0xff]   ;;  %p1574_p4 = scmp.lt.s32.totalorder %s2070_s12, %s1572_s17  ;;  %p1575_p9 = scmp.lt.s32.totalorder %s1573_s14, %s1567_s10 }
  0xa5   : > { %1264 = vmatpush3.bf16.msra.mxu1 %v1426_v7  ;;  %1201 = vmatprep.subr.bf16.mxu0 %v1427_v8  ;;  %v1442_v23 = vld [vmem:[#allocation7 + $0x28] sm:$0xff]   ;;  %v1443_v24 = vld [vmem:[#allocation8 + $0x70] sm:$0xff]   ;;  %v1447_v28 = vld [vmem:[#allocation8 + $0x78] sm:$0xff]   ;;  %p1570_p3 = pneg %p1569_p10 }
  0xa6   : > { %1265 = vmatprep.subr.bf16.mxu1 %v1428_v9  ;;  %v1444_v25 = vld [vmem:[#allocation7 + $0x70] sm:$0xff]   ;;  %v1448_v29 = vld [vmem:[#allocation7 + $0x78] sm:$0xff]   ;;  %v441_v32 = vld [vmem:[%s1947_s28 + $0x8] sm:$0xff]  ;;  %p1576_p5 = por %p1575_p9, %p1574_p4 }
  0xa7   : > { %v1445_v26 = vld [vmem:[#allocation8 + $0x30] sm:$0xff]   ;;  %v1449_v30 = vld [vmem:[#allocation8 + $0x38] sm:$0xff]   ;;  %v361_v34 = vld [vmem:[%s1940_s29 + $0x8] sm:$0xff] }
  0xa8   : > { %1202 = vmatpush3.bf16.msra.mxu0 %v1429_v10  ;;  %v1446_v27 = vld [vmem:[#allocation7 + $0x30] sm:$0xff]   ;;  %v1450_v31 = vld [vmem:[#allocation7 + $0x38] sm:$0xff]   ;;  %v440_v37 = vld [vmem:[%s1947_s28] sm:$0xff]  ;;  %p1577_p7 = pnand %p1576_p5, %p1570_p3 }
  0xa9   : > { %1266 = vmatpush3.bf16.msra.mxu1 %v1430_v11  ;;  %1203 = vmatprep.subr.bf16.mxu0 %v1431_v12  ;;  %v443_v33 = vld [vmem:[%s1947_s28 + $0x18] sm:$0xff]  ;;  %v442_v38 = vld [vmem:[%s1947_s28 + $0x10] sm:$0xff]  ;;  %v360_v41 = vld [vmem:[%s1940_s29] sm:$0xff] }
  0xaa   : > { %1267 = vmatprep.subr.bf16.mxu1 %v1432_v13  ;;  %v473_v35 = vpack.c.bf16 %v443_v33, %v441_v32  ;;  %v363_v36 = vld [vmem:[%s1940_s29 + $0x18] sm:$0xff]  ;;  %v472_v40 = vpack.c.bf16 %v442_v38, %v440_v37  ;;  %v362_v42 = vld [vmem:[%s1940_s29 + $0x10] sm:$0xff]  ;;  %v445_v43 = vld [vmem:[%s1947_s28 + $0x28] sm:$0xff] }
  0xab   : > { %v393_v39 = vpack.c.bf16 %v363_v36, %v361_v34  ;;  %v392_v44 = vpack.c.bf16 %v362_v42, %v360_v41  ;;  %v447_v45 = vld [vmem:[%s1947_s28 + $0x38] sm:$0xff]  ;;  %v365_v46 = vld [vmem:[%s1940_s29 + $0x28] sm:$0xff]  ;;  %v444_v50 = vld [vmem:[%s1947_s28 + $0x20] sm:$0xff] }
  0xac   : > { %1204 = vmatpush3.bf16.msra.mxu0 %v1433_v14  ;;  %648 = vmatprep.mubr.bf16.mxu0 %v473_v35  ;;  %v367_v47 = vld [vmem:[%s1940_s29 + $0x38] sm:$0xff]  ;;  %v475_v48 = vpack.c.bf16 %v447_v45, %v445_v43  ;;  %v446_v51 = vld [vmem:[%s1947_s28 + $0x30] sm:$0xff]  ;;  %v364_v52 = vld [vmem:[%s1940_s29 + $0x20] sm:$0xff] }
  0xad   : > { %1268 = vmatpush3.bf16.msra.mxu1 %v1434_v15  ;;  %1205 = vmatprep.subr.bf16.mxu0 %v1435_v16  ;;  %v395_v49 = vpack.c.bf16 %v367_v47, %v365_v46  ;;  %v366_v53 = vld [vmem:[%s1940_s29 + $0x30] sm:$0xff]  ;;  %v449_v54 = vld [vmem:[%s1947_s28 + $0x48] sm:$0xff]  ;;  %v451_v55 = vld [vmem:[%s1947_s28 + $0x58] sm:$0xff]  ;;  %v474_v58 = vpack.c.bf16 %v446_v51, %v444_v50 }
  0xae   : > { %1269 = vmatprep.subr.bf16.mxu1 %v1436_v17  ;;  %841 = vmatprep.mubr.bf16.mxu1 %v393_v39  ;;  %v369_v56 = vld [vmem:[%s1940_s29 + $0x48] sm:$0xff]  ;;  %v371_v57 = vld [vmem:[%s1940_s29 + $0x58] sm:$0xff]  ;;  %v394_v59 = vpack.c.bf16 %v366_v53, %v364_v52  ;;  %v477_v60 = vpack.c.bf16 %v451_v55, %v449_v54  ;;  %v448_v62 = vld [vmem:[%s1947_s28 + $0x40] sm:$0xff] }
  0xaf   : > { %v397_v61 = vpack.c.bf16 %v371_v57, %v369_v56  ;;  %v450_v63 = vld [vmem:[%s1947_s28 + $0x50] sm:$0xff]  ;;  %v368_v0 = vld [vmem:[%s1940_s29 + $0x40] sm:$0xff]  ;;  %v453_v2 = vld [vmem:[%s1947_s28 + $0x68] sm:$0xff] }
  0xb0   : > { %1206 = vmatpush3.bf16.msra.mxu0 %v1437_v18  ;;  %v370_v1 = vld [vmem:[%s1940_s29 + $0x50] sm:$0xff]  ;;  %v455_v3 = vld [vmem:[%s1947_s28 + $0x78] sm:$0xff]  ;;  %v373_v4 = vld [vmem:[%s1940_s29 + $0x68] sm:$0xff]  ;;  %v476_v6 = vpack.c.bf16 %v450_v63, %v448_v62 }
  0xb1   : > { %1270 = vmatpush3.bf16.msra.mxu1 %v1438_v19  ;;  %1207 = vmatprep.subr.bf16.mxu0 %v1439_v20  ;;  %v375_v5 = vld [vmem:[%s1940_s29 + $0x78] sm:$0xff]  ;;  %v396_v7 = vpack.c.bf16 %v370_v1, %v368_v0  ;;  %v479_v8 = vpack.c.bf16 %v455_v3, %v453_v2  ;;  %v452_v10 = vld [vmem:[%s1947_s28 + $0x60] sm:$0xff]  ;;  %v454_v11 = vld [vmem:[%s1947_s28 + $0x70] sm:$0xff] }
  0xb2   : > { %1271 = vmatprep.subr.bf16.mxu1 %v1440_v21  ;;  %v399_v9 = vpack.c.bf16 %v375_v5, %v373_v4  ;;  %v372_v12 = vld [vmem:[%s1940_s29 + $0x60] sm:$0xff]  ;;  %v374_v13 = vld [vmem:[%s1940_s29 + $0x70] sm:$0xff]  ;;  %v457_v14 = vld [vmem:[%s1947_s28 + $0x88] sm:$0xff]  ;;  %v478_v18 = vpack.c.bf16 %v454_v11, %v452_v10 }
  0xb3   : > { %v459_v15 = vld [vmem:[%s1947_s28 + $0x98] sm:$0xff]  ;;  %v377_v16 = vld [vmem:[%s1940_s29 + $0x88] sm:$0xff]  ;;  %v398_v19 = vpack.c.bf16 %v374_v13, %v372_v12  ;;  %v460_v34 = vld [vmem:[%s1947_s28 + $0xa0] sm:$0xff] }
  0xb4   : > { %1208 = vmatpush3.bf16.msra.mxu0 %v1441_v22  ;;  %v379_v17 = vld [vmem:[%s1940_s29 + $0x98] sm:$0xff]  ;;  %v481_v20 = vpack.c.bf16 %v459_v15, %v457_v14  ;;  %v456_v22 = vld [vmem:[%s1947_s28 + $0x80] sm:$0xff]  ;;  %v462_v35 = vld [vmem:[%s1947_s28 + $0xb0] sm:$0xff] }
  0xb5   : > { %1272 = vmatpush3.bf16.msra.mxu1 %v1442_v23  ;;  %1209 = vmatprep.subr.bf16.mxu0 %v1443_v24  ;;  %v401_v21 = vpack.c.bf16 %v379_v17, %v377_v16  ;;  %v458_v23 = vld [vmem:[%s1947_s28 + $0x90] sm:$0xff]  ;;  %v376_v24 = vld [vmem:[%s1940_s29 + $0x80] sm:$0xff]  ;;  %v465_v38 = vld [vmem:[%s1947_s28 + $0xc8] sm:$0xff]  ;;  %v482_v42 = vpack.c.bf16 %v462_v35, %v460_v34 }
  0xb6   : > { %1273 = vmatprep.subr.bf16.mxu1 %v1444_v25  ;;  %v378_v25 = vld [vmem:[%s1940_s29 + $0x90] sm:$0xff]  ;;  %v380_v36 = vld [vmem:[%s1940_s29 + $0xa0] sm:$0xff]  ;;  %v467_v39 = vld [vmem:[%s1947_s28 + $0xd8] sm:$0xff] }
  0xb7   : > { %v382_v37 = vld [vmem:[%s1940_s29 + $0xb0] sm:$0xff]  ;;  %v387_v41 = vld [vmem:[%s1940_s29 + $0xd8] sm:$0xff]  ;;  %v464_v46 = vld [vmem:[%s1947_s28 + $0xc0] sm:$0xff] }
  0xb8   : > { %1210 = vmatpush3.bf16.msra.mxu0 %v1445_v26  ;;  %v461_v26 = vld [vmem:[%s1947_s28 + $0xa8] sm:$0xff]  ;;  %v402_v43 = vpack.c.bf16 %v382_v37, %v380_v36  ;;  %v466_v47 = vld [vmem:[%s1947_s28 + $0xd0] sm:$0xff]  ;;  %v471_v51 = vld [vmem:[%s1947_s28 + $0xf8] sm:$0xff] }
  0xb9   : > { %1274 = vmatpush3.bf16.msra.mxu1 %v1446_v27  ;;  %1211 = vmatprep.subr.bf16.mxu0 %v1447_v28  ;;  %v463_v27 = vld [vmem:[%s1947_s28 + $0xb8] sm:$0xff]  ;;  %v381_v28 = vld [vmem:[%s1940_s29 + $0xa8] sm:$0xff]  ;;  %v484_v54 = vpack.c.bf16 %v466_v47, %v464_v46 }
  0xba   : > { %1275 = vmatprep.subr.bf16.mxu1 %v1448_v29  ;;  %v383_v29 = vld [vmem:[%s1940_s29 + $0xb8] sm:$0xff]  ;;  %v483_v32 = vpack.c.bf16 %v463_v27, %v461_v26  ;;  %v469_v50 = vld [vmem:[%s1947_s28 + $0xe8] sm:$0xff] }
  0xbb   : > { %v403_v33 = vpack.c.bf16 %v383_v29, %v381_v28  ;;  %v389_v52 = vld [vmem:[%s1940_s29 + $0xe8] sm:$0xff]  ;;  %v391_v53 = vld [vmem:[%s1940_s29 + $0xf8] sm:$0xff]  ;;  %v487_v56 = vpack.c.bf16 %v471_v51, %v469_v50 }
  0xbc   : > { %1212 = vmatpush3.bf16.msra.mxu0 %v1449_v30  ;;  %v480_v30 = vpack.c.bf16 %v458_v23, %v456_v22  ;;  %v407_v57 = vpack.c.bf16 %v391_v53, %v389_v52 }
  0xbd   : > { %1276 = vmatpush3.bf16.msra.mxu1 %v1450_v31  ;;  %v400_v31 = vpack.c.bf16 %v378_v25, %v376_v24 }
  0xbf   : > { %649 = vmatmul.mubr.bf16.vlgmr.msra.gmra.mrb[0].mxu0 %v472_v40  ;;  %v385_v40 = vld [vmem:[%s1940_s29 + $0xc8] sm:$0xff] }
  0xc0   : > { %842 = vmatmul.mubr.bf16.vlgmr.msra.gmra.mrb[0].mxu1 %v392_v44  ;;  %656 = vmatprep.mubr.bf16.mxu0 %v475_v48  ;;  %v485_v44 = vpack.c.bf16 %v467_v39, %v465_v38  ;;  %v405_v45 = vpack.c.bf16 %v387_v41, %v385_v40  ;;  %v384_v48 = vld [vmem:[%s1940_s29 + $0xc0] sm:$0xff] }
  0xc1   : > { %849 = vmatprep.mubr.bf16.mxu1 %v395_v49  ;;  %v386_v49 = vld [vmem:[%s1940_s29 + $0xd0] sm:$0xff] }
  0xc2   : > { %v404_v55 = vpack.c.bf16 %v386_v49, %v384_v48 }
  0xc7   : > { %657 = vmatmul.mubr.bf16.gmra.mrb[4].mxu0 %v474_v58  ;;  %v468_v58 = vld [vmem:[%s1947_s28 + $0xe0] sm:$0xff] }
  0xc8   : > { %850 = vmatmul.mubr.bf16.gmra.mrb[4].mxu1 %v394_v59  ;;  %664 = vmatprep.mubr.bf16.mxu0 %v477_v60  ;;  %v470_v59 = vld [vmem:[%s1947_s28 + $0xf0] sm:$0xff]  ;;  %v388_v60 = vld [vmem:[%s1940_s29 + $0xe0] sm:$0xff] }
  0xc9   : > { %857 = vmatprep.mubr.bf16.mxu1 %v397_v61  ;;  %v390_v61 = vld [vmem:[%s1940_s29 + $0xf0] sm:$0xff]  ;;  %v486_v62 = vpack.c.bf16 %v470_v59, %v468_v58 }
  0xca   : > { %v406_v63 = vpack.c.bf16 %v390_v61, %v388_v60 }
  0xcf   : > { %665 = vmatmul.mubr.bf16.gmra.mrb[8].mxu0 %v476_v6 }
  0xd0   : > { %858 = vmatmul.mubr.bf16.gmra.mrb[8].mxu1 %v396_v7  ;;  %672 = vmatprep.mubr.bf16.mxu0 %v479_v8 }
  0xd1   : > { %865 = vmatprep.mubr.bf16.mxu1 %v399_v9  ;;  %v2028_v9 = vld [vmem:[%s2125_s4] ss:$0 sm:$0xff] }
  0xd7   : > { %673 = vmatmul.mubr.bf16.gmra.mrb[12].mxu0 %v478_v18 }
  0xd8   : > { %866 = vmatmul.mubr.bf16.gmra.mrb[12].mxu1 %v398_v19  ;;  %680 = vmatprep.mubr.bf16.mxu0 %v481_v20 }
  0xd9   : > { %873 = vmatprep.mubr.bf16.mxu1 %v401_v21 }
  0xdf   : > { %681 = vmatmul.mubr.bf16.gmra.mrb[16].mxu0 %v480_v30 }
  0xe0   : > { %874 = vmatmul.mubr.bf16.gmra.mrb[16].mxu1 %v400_v31  ;;  %688 = vmatprep.mubr.bf16.mxu0 %v483_v32 }
  0xe1   : > { %881 = vmatprep.mubr.bf16.mxu1 %v403_v33 }
  0xe7   : > { %689 = vmatmul.mubr.bf16.gmra.mrb[20].mxu0 %v482_v42 }
  0xe8   : > { %882 = vmatmul.mubr.bf16.gmra.mrb[20].mxu1 %v402_v43  ;;  %696 = vmatprep.mubr.bf16.mxu0 %v485_v44 }
  0xe9   : > { %889 = vmatprep.mubr.bf16.mxu1 %v405_v45 }
  0xef   : > { %697 = vmatmul.mubr.bf16.gmra.mrb[24].mxu0 %v484_v54 }
  0xf0   : > { %890 = vmatmul.mubr.bf16.gmra.mrb[24].mxu1 %v404_v55  ;;  %704 = vmatprep.mubr.bf16.mxu0 %v487_v56 }
  0xf1   : > { %897 = vmatprep.mubr.bf16.mxu1 %v407_v57 }
  0xf7   : > { %705 = vmatmul.mubr.bf16.gmra.mrb[28].mxu0 %v486_v62 }
  0xf8   : > { %898 = vmatmul.mubr.bf16.gmra.mrb[28].mxu1 %v406_v63 }
 0x192   : > { %v1213_v0 = vpop.f32.mrb[0].mxu0 }
 0x193   : > { %v1277_v1 = vpop.f32.mrb[0].mxu1  ;;  %v1214_v2 = vpop.f32.mrb[1].mxu0 }
 0x194   : > { %v1215_v3 = vadd.f32 %v1214_v2, %v1213_v0  ;;  %v1278_v4 = vpop.f32.mrb[1].mxu1  ;;  %v1216_v5 = vpop.f32.mrb[2].mxu0 }
 0x195   : > { %v1279_v6 = vadd.f32 %v1278_v4, %v1277_v1  ;;  %v1280_v7 = vpop.f32.mrb[2].mxu1  ;;  %v1217_v8 = vpop.f32.mrb[3].mxu0 }
 0x196   : > { %v1218_v10 = vadd.f32 %v1217_v8, %v1216_v5  ;;  %v1281_v11 = vpop.f32.mrb[3].mxu1 }
 0x197   : > { %v844_v12 = vadd.f32 %v1279_v6, %v1215_v3  ;;  %v1282_v13 = vadd.f32 %v1281_v11, %v1280_v7 }
 0x199   : > { %v913_v14 = vadd.f32 %v2028_v9, %v844_v12  ;;  %v847_v15 = vadd.f32 %v1282_v13, %v1218_v10 }
 0x19a   : > { %v1219_v16 = vpop.f32.mrb[4].mxu0 }
 0x19b   : > { %v929_v17 = vmax.f32 %v913_v14, 0.0  ;;  %v914_v18 = vadd.f32 %v2028_v9, %v847_v15  ;;  %v1283_v19 = vpop.f32.mrb[4].mxu1  ;;  %v1220_v20 = vpop.f32.mrb[5].mxu0 }
 0x19c   : > { %v1221_v21 = vadd.f32 %v1220_v20, %v1219_v16  ;;  %v1284_v22 = vpop.f32.mrb[5].mxu1  ;;  %v1222_v23 = vpop.f32.mrb[6].mxu0 }
 0x19d   : > { %v945_v24 = vmin.f32 %v929_v17, 1.0  ;;  %v930_v25 = vmax.f32 %v914_v18, 0.0  ;;  %v1285_v26 = vadd.f32 %v1284_v22, %v1283_v19  ;;  %v1286_v27 = vpop.f32.mrb[6].mxu1  ;;  %v1223_v28 = vpop.f32.mrb[7].mxu0 }
 0x19e   : > { %v1224_v29 = vadd.f32 %v1223_v28, %v1222_v23  ;;  %v1287_v30 = vpop.f32.mrb[7].mxu1 }
 0x19f   : > { %961 = vst [vmem:[%s2033_s9] sm:$0xff] %v945_v24  ;;  %v946_v31 = vmin.f32 %v930_v25, 1.0  ;;  %v852_v32 = vadd.f32 %v1285_v26, %v1221_v21  ;;  %v1288_v33 = vadd.f32 %v1287_v30, %v1286_v27 }
 0x1a1   : > { %962 = vst [vmem:[%s2033_s9 + $0x8] sm:$0xff] %v946_v31  ;;  %v915_v34 = vadd.f32 %v2028_v9, %v852_v32  ;;  %v855_v35 = vadd.f32 %v1288_v33, %v1224_v29 }
 0x1a2   : > { %v1225_v36 = vpop.f32.mrb[8].mxu0 }
 0x1a3   : > { %v931_v37 = vmax.f32 %v915_v34, 0.0  ;;  %v916_v38 = vadd.f32 %v2028_v9, %v855_v35  ;;  %v1289_v39 = vpop.f32.mrb[8].mxu1  ;;  %v1226_v40 = vpop.f32.mrb[9].mxu0 }
 0x1a4   : > { %v1227_v41 = vadd.f32 %v1226_v40, %v1225_v36  ;;  %v1290_v42 = vpop.f32.mrb[9].mxu1  ;;  %v1228_v43 = vpop.f32.mrb[10].mxu0 }
 0x1a5   : > { %v947_v44 = vmin.f32 %v931_v37, 1.0  ;;  %v932_v45 = vmax.f32 %v916_v38, 0.0  ;;  %v1291_v46 = vadd.f32 %v1290_v42, %v1289_v39  ;;  %v1292_v47 = vpop.f32.mrb[10].mxu1  ;;  %v1229_v48 = vpop.f32.mrb[11].mxu0 }
 0x1a6   : > { %v1230_v49 = vadd.f32 %v1229_v48, %v1228_v43  ;;  %v1293_v50 = vpop.f32.mrb[11].mxu1 }
 0x1a7   : > { %963 = vst [vmem:[%s2033_s9 + $0x10] sm:$0xff] %v947_v44  ;;  %v948_v51 = vmin.f32 %v932_v45, 1.0  ;;  %v860_v52 = vadd.f32 %v1291_v46, %v1227_v41  ;;  %v1294_v53 = vadd.f32 %v1293_v50, %v1292_v47 }
 0x1a9   : > { %964 = vst [vmem:[%s2033_s9 + $0x18] sm:$0xff] %v948_v51  ;;  %v917_v54 = vadd.f32 %v2028_v9, %v860_v52  ;;  %v863_v55 = vadd.f32 %v1294_v53, %v1230_v49 }
 0x1aa   : > { %v1231_v56 = vpop.f32.mrb[12].mxu0 }
 0x1ab   : > { %v933_v57 = vmax.f32 %v917_v54, 0.0  ;;  %v918_v58 = vadd.f32 %v2028_v9, %v863_v55  ;;  %v1295_v59 = vpop.f32.mrb[12].mxu1  ;;  %v1232_v60 = vpop.f32.mrb[13].mxu0 }
 0x1ac   : > { %v1233_v61 = vadd.f32 %v1232_v60, %v1231_v56  ;;  %v1296_v62 = vpop.f32.mrb[13].mxu1  ;;  %v1234_v63 = vpop.f32.mrb[14].mxu0 }
 0x1ad   : > { %v949_v0 = vmin.f32 %v933_v57, 1.0  ;;  %v934_v1 = vmax.f32 %v918_v58, 0.0  ;;  %v1297_v2 = vadd.f32 %v1296_v62, %v1295_v59  ;;  %v1298_v3 = vpop.f32.mrb[14].mxu1  ;;  %v1235_v4 = vpop.f32.mrb[15].mxu0 }
 0x1ae   : > { %v1236_v5 = vadd.f32 %v1235_v4, %v1234_v63  ;;  %v1299_v6 = vpop.f32.mrb[15].mxu1 }
 0x1af   : > { %965 = vst [vmem:[%s2033_s9 + $0x20] sm:$0xff] %v949_v0  ;;  %v950_v7 = vmin.f32 %v934_v1, 1.0  ;;  %v868_v8 = vadd.f32 %v1297_v2, %v1233_v61  ;;  %v1300_v10 = vadd.f32 %v1299_v6, %v1298_v3 }
 0x1b1   : > { %966 = vst [vmem:[%s2033_s9 + $0x28] sm:$0xff] %v950_v7  ;;  %v919_v11 = vadd.f32 %v2028_v9, %v868_v8  ;;  %v871_v12 = vadd.f32 %v1300_v10, %v1236_v5 }
 0x1b2   : > { %v1237_v13 = vpop.f32.mrb[16].mxu0 }
 0x1b3   : > { %v935_v14 = vmax.f32 %v919_v11, 0.0  ;;  %v920_v15 = vadd.f32 %v2028_v9, %v871_v12  ;;  %v1301_v16 = vpop.f32.mrb[16].mxu1  ;;  %v1238_v17 = vpop.f32.mrb[17].mxu0 }
 0x1b4   : > { %v1239_v18 = vadd.f32 %v1238_v17, %v1237_v13  ;;  %v1302_v19 = vpop.f32.mrb[17].mxu1  ;;  %v1240_v20 = vpop.f32.mrb[18].mxu0 }
 0x1b5   : > { %v951_v21 = vmin.f32 %v935_v14, 1.0  ;;  %v936_v22 = vmax.f32 %v920_v15, 0.0  ;;  %v1303_v23 = vadd.f32 %v1302_v19, %v1301_v16  ;;  %v1304_v24 = vpop.f32.mrb[18].mxu1  ;;  %v1241_v25 = vpop.f32.mrb[19].mxu0 }
 0x1b6   : > { %v1242_v26 = vadd.f32 %v1241_v25, %v1240_v20  ;;  %v1305_v27 = vpop.f32.mrb[19].mxu1 }
 0x1b7   : > { %967 = vst [vmem:[%s2033_s9 + $0x30] sm:$0xff] %v951_v21  ;;  %v952_v28 = vmin.f32 %v936_v22, 1.0  ;;  %v876_v29 = vadd.f32 %v1303_v23, %v1239_v18  ;;  %v1306_v30 = vadd.f32 %v1305_v27, %v1304_v24 }
 0x1b9   : > { %968 = vst [vmem:[%s2033_s9 + $0x38] sm:$0xff] %v952_v28  ;;  %v921_v31 = vadd.f32 %v2028_v9, %v876_v29  ;;  %v879_v32 = vadd.f32 %v1306_v30, %v1242_v26 }
 0x1ba   : > { %v1243_v33 = vpop.f32.mrb[20].mxu0 }
 0x1bb   : > { %v937_v34 = vmax.f32 %v921_v31, 0.0  ;;  %v922_v35 = vadd.f32 %v2028_v9, %v879_v32  ;;  %v1307_v36 = vpop.f32.mrb[20].mxu1  ;;  %v1244_v37 = vpop.f32.mrb[21].mxu0 }
 0x1bc   : > { %v1245_v38 = vadd.f32 %v1244_v37, %v1243_v33  ;;  %v1308_v39 = vpop.f32.mrb[21].mxu1  ;;  %v1246_v40 = vpop.f32.mrb[22].mxu0 }
 0x1bd   : > { %v953_v41 = vmin.f32 %v937_v34, 1.0  ;;  %v938_v42 = vmax.f32 %v922_v35, 0.0  ;;  %v1309_v43 = vadd.f32 %v1308_v39, %v1307_v36  ;;  %v1310_v44 = vpop.f32.mrb[22].mxu1  ;;  %v1247_v45 = vpop.f32.mrb[23].mxu0 }
 0x1be   : > { %v1248_v46 = vadd.f32 %v1247_v45, %v1246_v40  ;;  %v1311_v47 = vpop.f32.mrb[23].mxu1 }
 0x1bf   : > { %969 = vst [vmem:[%s2033_s9 + $0x40] sm:$0xff] %v953_v41  ;;  %v954_v48 = vmin.f32 %v938_v42, 1.0  ;;  %v884_v49 = vadd.f32 %v1309_v43, %v1245_v38  ;;  %v1312_v50 = vadd.f32 %v1311_v47, %v1310_v44 }
 0x1c1   : > { %970 = vst [vmem:[%s2033_s9 + $0x48] sm:$0xff] %v954_v48  ;;  %v923_v51 = vadd.f32 %v2028_v9, %v884_v49  ;;  %v887_v52 = vadd.f32 %v1312_v50, %v1248_v46 }
 0x1c2   : > { %v1249_v53 = vpop.f32.mrb[24].mxu0 }
 0x1c3   : > { %v939_v54 = vmax.f32 %v923_v51, 0.0  ;;  %v924_v55 = vadd.f32 %v2028_v9, %v887_v52  ;;  %v1313_v56 = vpop.f32.mrb[24].mxu1  ;;  %v1250_v57 = vpop.f32.mrb[25].mxu0 }
 0x1c4   : > { %v1251_v58 = vadd.f32 %v1250_v57, %v1249_v53  ;;  %v1314_v59 = vpop.f32.mrb[25].mxu1  ;;  %v1252_v60 = vpop.f32.mrb[26].mxu0 }
 0x1c5   : > { %v955_v61 = vmin.f32 %v939_v54, 1.0  ;;  %v940_v62 = vmax.f32 %v924_v55, 0.0  ;;  %v1315_v63 = vadd.f32 %v1314_v59, %v1313_v56  ;;  %v1316_v0 = vpop.f32.mrb[26].mxu1  ;;  %v1253_v1 = vpop.f32.mrb[27].mxu0 }
 0x1c6   : > { %v1254_v2 = vadd.f32 %v1253_v1, %v1252_v60  ;;  %v1317_v3 = vpop.f32.mrb[27].mxu1 }
 0x1c7   : > { %971 = vst [vmem:[%s2033_s9 + $0x50] sm:$0xff] %v955_v61  ;;  %v956_v4 = vmin.f32 %v940_v62, 1.0  ;;  %v892_v5 = vadd.f32 %v1315_v63, %v1251_v58  ;;  %v1318_v6 = vadd.f32 %v1317_v3, %v1316_v0 }
 0x1c9   : > { %972 = vst [vmem:[%s2033_s9 + $0x58] sm:$0xff] %v956_v4  ;;  %v925_v7 = vadd.f32 %v2028_v9, %v892_v5  ;;  %v895_v8 = vadd.f32 %v1318_v6, %v1254_v2 }
 0x1ca   : > { %v1255_v10 = vpop.f32.mrb[28].mxu0 }
 0x1cb   : > { %v941_v11 = vmax.f32 %v925_v7, 0.0  ;;  %v926_v12 = vadd.f32 %v2028_v9, %v895_v8  ;;  %v1319_v13 = vpop.f32.mrb[28].mxu1  ;;  %v1256_v14 = vpop.f32.mrb[29].mxu0 }
 0x1cc   : > { %v1257_v15 = vadd.f32 %v1256_v14, %v1255_v10  ;;  %v1320_v16 = vpop.f32.mrb[29].mxu1  ;;  %v1258_v17 = vpop.f32.mrb[30].mxu0 }
 0x1cd   : > { %v957_v18 = vmin.f32 %v941_v11, 1.0  ;;  %v942_v19 = vmax.f32 %v926_v12, 0.0  ;;  %v1321_v20 = vadd.f32 %v1320_v16, %v1319_v13  ;;  %v1322_v21 = vpop.f32.mrb[30].mxu1  ;;  %v1259_v22 = vpop.f32.mrb[31].mxu0 }
 0x1ce   : > { %v1260_v23 = vadd.f32 %v1259_v22, %v1258_v17  ;;  %v1323_v24 = vpop.f32.mrb[31].mxu1 }
 0x1cf   : > { %973 = vst [vmem:[%s2033_s9 + $0x60] sm:$0xff] %v957_v18  ;;  %v958_v25 = vmin.f32 %v942_v19, 1.0  ;;  %v900_v26 = vadd.f32 %v1321_v20, %v1257_v15  ;;  %v1324_v27 = vadd.f32 %v1323_v24, %v1322_v21 }
 0x1d1   : > { %974 = vst [vmem:[%s2033_s9 + $0x68] sm:$0xff] %v958_v25  ;;  %v927_v28 = vadd.f32 %v2028_v9, %v900_v26  ;;  %v903_v29 = vadd.f32 %v1324_v27, %v1260_v23 }
 0x1d3   : > { %v943_v30 = vmax.f32 %v927_v28, 0.0  ;;  %v928_v31 = vadd.f32 %v2028_v9, %v903_v29 }
 0x1d5   : > { %v959_v32 = vmin.f32 %v943_v30, 1.0  ;;  %v944_v33 = vmax.f32 %v928_v31, 0.0 }
 0x1d7   : > { %975 = vst [vmem:[%s2033_s9 + $0x70] sm:$0xff] %v959_v32  ;;  %v960_v34 = vmin.f32 %v944_v33, 1.0 }
 0x1d9   : > { %976 = vst [vmem:[%s2033_s9 + $0x78] sm:$0xff] %v960_v34 }
 0x1da   : > { %1580 = shalt.err (!%p1577_p7)
}
 0x1db   : > { %s1581_s30 = scalar_lea.hbm %s2068_s2, 2048  ;;  %s1585_s3 = scalar_lea.hbm %s2126_s5, 4096 }
 0x1dc   : > { %p1582_p11 = scmp.ne.s32.totalorder %s2068_s2, %s1581_s30  ;;  %p1586_p12 = scmp.lt.u32.totalorder %s2068_s2, %s2126_s5 }
 0x1dd   : > { %p1587_p13 = scmp.lt.u32.totalorder %s1585_s3, %s1581_s30  ;;  %p1589_p1 = scmp.lt.u32.totalorder %s1581_s30, %s2068_s2 }
 0x1de   : > { %p1583_p2 = pnand %p1582_p11, %p2152_p6 }
 0x1df   : > { %p1588_p0 = por %p1587_p13, %p1586_p12 }
 0x1e0   : > { %p1584_p8 = pneg %p1583_p2 }
 0x1e1   : > { %p1590_p10 = por %p1589_p1, %p1588_p0 }
 0x1e3   : > { %p1591_p3 = pnand %p1590_p10, %p1584_p8 }
 0x1e5   : > { %1594 = shalt.err (!%p1591_p3)
}
 0x1e6   : > { %s1672_s26 = smov 128   ;;  %s1673_s16 = smov 8  }
 0x1e7   : > { %1337 = dma.vmem_to_hbm [thread:$0]  (%p2152_p6), %s2070_s12, 2048, %s2068_s2, %s978_s8, %s1672_s26, %s1672_s26, %s1673_s16  }
 0x1e8 PF: > { %s1007_s9 = sand.u32 1, %s1641_s18   ;;  %p2153_p4 = scmp.ne.s32.totalorder %s2136_s27, 0 }
 0x1e9   : > { %p2154_p9 = scmp.ge.s32.totalorder %s1661_s23, 2  ;;  %s1008_s13 = scalar_lea.sflag [#allocation4], %s1007_s9 }
 0x1eb   : > { %p1354_p5 = pnand %p2154_p9, %p2153_p4 }
 0x1ed   : > { %1636 = dma.done.wait (!%p1354_p5), %s1008_s13, 2048  }
 0x1ee   : > { %1638 = vsyncadd (!%p1354_p5), %s1008_s13, 4294965248  ;;  %s25_s23 = sadd.s32 1, %s1661_s23   ;;  %s2155_s6 = sld [smem:[#allocation16_spill]] }
 0x1ef   : > { %p22_p7 = scmp.ge.s32.totalorder %s25_s23, 4   ;;  %s2156_s18 = smov %s1645_s19 }
 0x1f0   : > { %s2157_s19 = smov %s1649_s20  ;;  %s2158_s20 = smov %s1844_s25 }
 0x1f1   : > { %s2159_s21 = smov %s1657_s22  ;;  %24 = sbr.rel (!%p22_p7) target bundleno = 13 (0xd), region = 111 }
 0x1f4   : > { %s2160_s22 = smov %s2155_s6 }
 0x1f8   :  { %1013 = vsyncpa [#allocation3], 1 }
 0x1f9   :  { %1015 = vsyncpa [#allocation3 + $0x1], 1 }
 0x1fa   :  { %1016 = vsyncpa [#allocation6], 1 }
 0x1fb   :  { %1018 = vsyncpa [#allocation6 + $0x1], 1 }
 0x1fc   :  { %1019 = vsyncpa [#allocation9], 1 }
 0x1fd   :  { %1020 = vsyncpa [#allocation4], 1 }
 0x1fe   :  { %1022 = vsyncpa [#allocation4 + $0x1], 1 }

</bundles_post_ra>
